<compile_context>
chip_gen: v5e
topology: v5e:2x2
jax: 0.10.0
libtpu: 0.0.40
codegen_flags: <defaults>
</compile_context>

<pallas_src>
import jax
import jax.numpy as jnp
from jax import lax
from jax.experimental import pallas as pl
from jax.experimental.pallas import tpu as pltpu


def fcn_kernel(x_ref, lkeep_ref, rkeep_ref,
               w1_ref, b1_ref, w2_ref, b2_ref, w3_ref, b3_ref,
               w4_ref, b4_ref, w5_ref, b5_ref,
               o_ref):
    """All operands are (channels, positions); positions = zero-padded B*L lane axis."""
    lkeep = lkeep_ref[...]          # (1, P) 0/1: zero where pos-1 crosses a sample edge
    rkeep = rkeep_ref[...]          # (1, P) 0/1: zero where pos+1 crosses a sample edge
    p = x_ref.shape[-1]

    def taps(h):
        # h[:, l-1] and h[:, l+1] within each sample, zeros at sample boundaries
        # (this also kills the wraparound through the padded tail).
        hl = pltpu.roll(h, shift=1, axis=1) * lkeep
        hr = pltpu.roll(h, shift=p - 1, axis=1) * rkeep
        return hl, hr

    # Layer 1 (Cin = 1): three VPU broadcast FMAs instead of a tiny MXU matmul.
    x = x_ref[...]                                        # (1, P)
    xl, xr = taps(x)
    h = (w1_ref[:, 0:1] * xl + w1_ref[:, 1:2] * x + w1_ref[:, 2:3] * xr
         + b1_ref[...])                                   # (16, P)
    h = jnp.maximum(h, 0.0)

    # Layers 2..5: im2col along the channel (sublane) axis + one MXU matmul each.
    def conv(h, w_ref, b_ref, relu):
        hl, hr = taps(h)
        hcat = jnp.concatenate([hl, h, hr], axis=0)       # (3*Cin, P), 8-aligned segments
        y = jnp.dot(w_ref[...], hcat,
                    preferred_element_type=jnp.float32) + b_ref[...]
        return jnp.maximum(y, 0.0) if relu else y

    h = conv(h, w2_ref, b2_ref, relu=True)
    h = conv(h, w3_ref, b3_ref, relu=True)
    h = conv(h, w4_ref, b4_ref, relu=True)
    o_ref[...] = conv(h, w5_ref, b5_ref, relu=False)      # (out_c, P) lane-dense store


def raman_fcn_forward(x, params_kernel):
    """x: (B, input_size) f32.  params_kernel: 5x (w (Cout, 3*Cin), b (Cout, 1))."""
    B, L = x.shape
    P = B * L
    P_pad = pl.cdiv(P, 128) * 128
    out_c = params_kernel[-1][0].shape[0]

    x_flat = x.reshape(1, P)                              # positions on the lane axis
    if P_pad != P:
        x_flat = jnp.pad(x_flat, ((0, 0), (0, P_pad - P)))

    pos = jnp.arange(P_pad) % L
    l_keep = (pos != 0).astype(jnp.float32)[None, :]         # left-neighbor valid?
    r_keep = (pos != (L - 1)).astype(jnp.float32)[None, :]   # right-neighbor valid?

    args = [x_flat, l_keep, r_keep]
    in_specs = [pl.BlockSpec((1, P_pad), lambda i: (0, 0)) for _ in range(3)]
    for w, b in params_kernel:
        args += [w, b]
        in_specs += [pl.BlockSpec(w.shape, lambda i: (0, 0)),
                     pl.BlockSpec(b.shape, lambda i: (0, 0))]

    # TODO(synk): for production-size L, tile over positions with a 1-sample halo
    # per layer and add a leading 'parallel' grid axis so v7x's two TensorCores
    # both get work and VMEM stays bounded; at this toy size one step is optimal.
    out = pl.pallas_call(
        fcn_kernel,
        out_shape=jax.ShapeDtypeStruct((out_c, P_pad), jnp.float32),
        grid=(1,),
        in_specs=in_specs,
        out_specs=pl.BlockSpec((out_c, P_pad), lambda i: (0, 0)),
        compiler_params=pltpu.CompilerParams(
            dimension_semantics=("arbitrary",)),
    )(*args)

    out = out[:, :P].reshape(out_c, B, L)    # drop pad columns
    out = jnp.transpose(out, (1, 0, 2))      # (B, out_c, L) == torch NCW
    if out.shape[1] == 1:
        out = jnp.squeeze(out, axis=1)       # torch's x.squeeze(1)
    return out


def init_params(key, input_size, output_size):
    """Deterministic synthetic Conv1d params (PyTorch shapes: w (Cout,Cin,3), b (Cout,))."""
    chans = [1, 16, 32, 64, 128, output_size]
    params_torch = []
    for i in range(5):
        cin, cout = chans[i], chans[i + 1]
        key, kw, kb = jax.random.split(key, 3)
        scale = 1.0 / jnp.sqrt(cin * 3.0)
        w = jax.random.uniform(kw, (cout, cin, 3), jnp.float32, -scale, scale)
        b = jax.random.uniform(kb, (cout,), jnp.float32, -scale, scale)
        params_torch.append((w, b))
    return params_torch


def to_kernel_params(params_torch):
    """Torch (Cout, Cin, 3) -> im2col (Cout, 3*Cin) with tap-major column order
    [k=0 (l-1) | k=1 (l) | k=2 (l+1)]; bias (Cout,) -> (Cout, 1)."""
    out = []
    for w, b in params_torch:
        cout, cin, k = w.shape
        w_flat = jnp.transpose(w, (0, 2, 1)).reshape(cout, k * cin)
        out.append((w_flat, b[:, None]))
    return out


def ref_forward(x, params_torch):
    """Pure-JAX reference mirroring the PyTorch forward (NCW conv)."""
    h = x[:, None, :]  # (B, 1, L)
    n = len(params_torch)
    for i, (w, b) in enumerate(params_torch):
        h = lax.conv_general_dilated(
            h, w, window_strides=(1,), padding=((1, 1),),
            dimension_numbers=("NCH", "OIH", "NCH"))
        h = h + b[None, :, None]
        if i < n - 1:
            h = jnp.maximum(h, 0.0)
    if h.shape[1] == 1:
        h = jnp.squeeze(h, axis=1)
    return h


if __name__ == "__main__":
    key = jax.random.PRNGKey(0)
    B, input_size, output_size = 2, 16, 1

    key, kx = jax.random.split(key)
    x = jax.random.normal(kx, (B, input_size), jnp.float32)

    params_torch = init_params(key, input_size, output_size)
    params_kernel = to_kernel_params(params_torch)

    out = raman_fcn_forward(x, params_kernel)
    out = jax.block_until_ready(out)

    ref = jax.block_until_ready(ref_forward(x, params_torch))
    assert out.shape == ref.shape, (out.shape, ref.shape)
    assert jnp.allclose(out, ref, atol=1e-4, rtol=1e-4), float(jnp.max(jnp.abs(out - ref)))

    print("KERNEL_OK")
</pallas_src>

<mosaic_0001>
module attributes {stable_mosaic.version = 11 : i64} {
  func.func @fcn_kernel(%arg0: i32, %arg1: memref<1x128xf32, #tpu.memory_space<vmem>>, %arg2: memref<1x128xf32, #tpu.memory_space<vmem>>, %arg3: memref<1x128xf32, #tpu.memory_space<vmem>>, %arg4: memref<16x3xf32, #tpu.memory_space<vmem>>, %arg5: memref<16x1xf32, #tpu.memory_space<vmem>>, %arg6: memref<32x48xf32, #tpu.memory_space<vmem>>, %arg7: memref<32x1xf32, #tpu.memory_space<vmem>>, %arg8: memref<64x96xf32, #tpu.memory_space<vmem>>, %arg9: memref<64x1xf32, #tpu.memory_space<vmem>>, %arg10: memref<128x192xf32, #tpu.memory_space<vmem>>, %arg11: memref<128x1xf32, #tpu.memory_space<vmem>>, %arg12: memref<1x384xf32, #tpu.memory_space<vmem>>, %arg13: memref<1x1xf32, #tpu.memory_space<vmem>>, %arg14: memref<1x128xf32, #tpu.memory_space<vmem>>) attributes {dimension_semantics = [#tpu.dimension_semantics<arbitrary>], iteration_bounds = array<i64: 1>, scalar_prefetch = 0 : i64, scratch_operands = 0 : i64, tpu.core_type = #tpu.core_type<tc>, window_params = [{pipeline_mode = #tpu.pipeline_mode<synchronous>, transform_indices = @transform_0, window_bounds = array<i64: 1, 128>}, {pipeline_mode = #tpu.pipeline_mode<synchronous>, transform_indices = @transform_1, window_bounds = array<i64: 1, 128>}, {pipeline_mode = #tpu.pipeline_mode<synchronous>, transform_indices = @transform_2, window_bounds = array<i64: 1, 128>}, {pipeline_mode = #tpu.pipeline_mode<synchronous>, transform_indices = @transform_3, window_bounds = array<i64: 16, 3>}, {pipeline_mode = #tpu.pipeline_mode<synchronous>, transform_indices = @transform_4, window_bounds = array<i64: 16, 1>}, {pipeline_mode = #tpu.pipeline_mode<synchronous>, transform_indices = @transform_5, window_bounds = array<i64: 32, 48>}, {pipeline_mode = #tpu.pipeline_mode<synchronous>, transform_indices = @transform_6, window_bounds = array<i64: 32, 1>}, {pipeline_mode = #tpu.pipeline_mode<synchronous>, transform_indices = @transform_7, window_bounds = array<i64: 64, 96>}, {pipeline_mode = #tpu.pipeline_mode<synchronous>, transform_indices = @transform_8, window_bounds = array<i64: 64, 1>}, {pipeline_mode = #tpu.pipeline_mode<synchronous>, transform_indices = @transform_9, window_bounds = array<i64: 128, 192>}, {pipeline_mode = #tpu.pipeline_mode<synchronous>, transform_indices = @transform_10, window_bounds = array<i64: 128, 1>}, {pipeline_mode = #tpu.pipeline_mode<synchronous>, transform_indices = @transform_11, window_bounds = array<i64: 1, 384>}, {pipeline_mode = #tpu.pipeline_mode<synchronous>, transform_indices = @transform_12, window_bounds = array<i64: 1, 1>}, {pipeline_mode = #tpu.pipeline_mode<synchronous>, transform_indices = @transform_13, window_bounds = array<i64: 1, 128>}]} {
    %c0 = arith.constant 0 : index
    %c0_0 = arith.constant 0 : index
    %0 = vector.load %arg2[%c0, %c0_0] : memref<1x128xf32, #tpu.memory_space<vmem>>, vector<1x128xf32>
    %c0_1 = arith.constant 0 : index
    %c0_2 = arith.constant 0 : index
    %1 = vector.load %arg3[%c0_1, %c0_2] : memref<1x128xf32, #tpu.memory_space<vmem>>, vector<1x128xf32>
    %c0_3 = arith.constant 0 : index
    %c0_4 = arith.constant 0 : index
    %2 = vector.load %arg1[%c0_3, %c0_4] : memref<1x128xf32, #tpu.memory_space<vmem>>, vector<1x128xf32>
    %c1_i32 = arith.constant 1 : i32
    %3 = tpu.dynamic_rotate %2 by %c1_i32 dim 1 : vector<1x128xf32>, i32 -> vector<1x128xf32>
    %4 = arith.mulf %3, %0 : vector<1x128xf32>
    %c127_i32 = arith.constant 127 : i32
    %5 = tpu.dynamic_rotate %2 by %c127_i32 dim 1 : vector<1x128xf32>, i32 -> vector<1x128xf32>
    %6 = arith.mulf %5, %1 : vector<1x128xf32>
    %c0_5 = arith.constant 0 : index
    %c0_6 = arith.constant 0 : index
    %7 = vector.load %arg4[%c0_5, %c0_6] : memref<16x3xf32, #tpu.memory_space<vmem>>, vector<16x1xf32>
    %8 = vector.broadcast %7 : vector<16x1xf32> to vector<16x128xf32>
    %9 = vector.broadcast %4 : vector<1x128xf32> to vector<16x128xf32>
    %10 = arith.mulf %8, %9 : vector<16x128xf32>
    %c0_7 = arith.constant 0 : index
    %c1 = arith.constant 1 : index
    %11 = vector.load %arg4[%c0_7, %c1] : memref<16x3xf32, #tpu.memory_space<vmem>>, vector<16x1xf32>
    %12 = vector.broadcast %11 : vector<16x1xf32> to vector<16x128xf32>
    %13 = vector.broadcast %2 : vector<1x128xf32> to vector<16x128xf32>
    %14 = arith.mulf %12, %13 : vector<16x128xf32>
    %15 = arith.addf %10, %14 : vector<16x128xf32>
    %c0_8 = arith.constant 0 : index
    %c2 = arith.constant 2 : index
    %16 = vector.load %arg4[%c0_8, %c2] : memref<16x3xf32, #tpu.memory_space<vmem>>, vector<16x1xf32>
    %17 = vector.broadcast %16 : vector<16x1xf32> to vector<16x128xf32>
    %18 = vector.broadcast %6 : vector<1x128xf32> to vector<16x128xf32>
    %19 = arith.mulf %17, %18 : vector<16x128xf32>
    %20 = arith.addf %15, %19 : vector<16x128xf32>
    %c0_9 = arith.constant 0 : index
    %c0_10 = arith.constant 0 : index
    %21 = vector.load %arg5[%c0_9, %c0_10] : memref<16x1xf32, #tpu.memory_space<vmem>>, vector<16x1xf32>
    %22 = vector.broadcast %21 : vector<16x1xf32> to vector<16x128xf32>
    %23 = arith.addf %20, %22 : vector<16x128xf32>
    %cst = arith.constant 0.000000e+00 : f32
    %24 = vector.broadcast %cst : f32 to vector<16x128xf32>
    %25 = arith.maximumf %23, %24 : vector<16x128xf32>
    %c1_i32_11 = arith.constant 1 : i32
    %26 = tpu.dynamic_rotate %25 by %c1_i32_11 dim 1 : vector<16x128xf32>, i32 -> vector<16x128xf32>
    %27 = vector.broadcast %0 : vector<1x128xf32> to vector<16x128xf32>
    %28 = arith.mulf %26, %27 : vector<16x128xf32>
    %c127_i32_12 = arith.constant 127 : i32
    %29 = tpu.dynamic_rotate %25 by %c127_i32_12 dim 1 : vector<16x128xf32>, i32 -> vector<16x128xf32>
    %30 = vector.broadcast %1 : vector<1x128xf32> to vector<16x128xf32>
    %31 = arith.mulf %29, %30 : vector<16x128xf32>
    %32 = tpu.concatenate %28, %25, %31 in 0 : vector<16x128xf32>, vector<16x128xf32>, vector<16x128xf32> -> vector<48x128xf32>
    %c0_13 = arith.constant 0 : index
    %c0_14 = arith.constant 0 : index
    %33 = vector.load %arg6[%c0_13, %c0_14] : memref<32x48xf32, #tpu.memory_space<vmem>>, vector<32x48xf32>
    %cst_15 = arith.constant dense<0.000000e+00> : vector<32x128xf32>
    %34 = tpu.matmul %33, %32, %cst_15 {dimension_numbers = #tpu.dot_dimension_numbers<[1], [0], [0], [1], [0, 0, 1, 1], [], []>} : vector<32x48xf32>, vector<48x128xf32>, vector<32x128xf32> -> vector<32x128xf32>
    %c0_16 = arith.constant 0 : index
    %c0_17 = arith.constant 0 : index
    %35 = vector.load %arg7[%c0_16, %c0_17] : memref<32x1xf32, #tpu.memory_space<vmem>>, vector<32x1xf32>
    %36 = vector.broadcast %35 : vector<32x1xf32> to vector<32x128xf32>
    %37 = arith.addf %34, %36 : vector<32x128xf32>
    %cst_18 = arith.constant 0.000000e+00 : f32
    %38 = vector.broadcast %cst_18 : f32 to vector<32x128xf32>
    %39 = arith.maximumf %37, %38 : vector<32x128xf32>
    %c1_i32_19 = arith.constant 1 : i32
    %40 = tpu.dynamic_rotate %39 by %c1_i32_19 dim 1 : vector<32x128xf32>, i32 -> vector<32x128xf32>
    %41 = vector.broadcast %0 : vector<1x128xf32> to vector<32x128xf32>
    %42 = arith.mulf %40, %41 : vector<32x128xf32>
    %c127_i32_20 = arith.constant 127 : i32
    %43 = tpu.dynamic_rotate %39 by %c127_i32_20 dim 1 : vector<32x128xf32>, i32 -> vector<32x128xf32>
    %44 = vector.broadcast %1 : vector<1x128xf32> to vector<32x128xf32>
    %45 = arith.mulf %43, %44 : vector<32x128xf32>
    %46 = tpu.concatenate %42, %39, %45 in 0 : vector<32x128xf32>, vector<32x128xf32>, vector<32x128xf32> -> vector<96x128xf32>
    %c0_21 = arith.constant 0 : index
    %c0_22 = arith.constant 0 : index
    %47 = vector.load %arg8[%c0_21, %c0_22] : memref<64x96xf32, #tpu.memory_space<vmem>>, vector<64x96xf32>
    %cst_23 = arith.constant dense<0.000000e+00> : vector<64x128xf32>
    %48 = tpu.matmul %47, %46, %cst_23 {dimension_numbers = #tpu.dot_dimension_numbers<[1], [0], [0], [1], [0, 0, 1, 1], [], []>} : vector<64x96xf32>, vector<96x128xf32>, vector<64x128xf32> -> vector<64x128xf32>
    %c0_24 = arith.constant 0 : index
    %c0_25 = arith.constant 0 : index
    %49 = vector.load %arg9[%c0_24, %c0_25] : memref<64x1xf32, #tpu.memory_space<vmem>>, vector<64x1xf32>
    %50 = vector.broadcast %49 : vector<64x1xf32> to vector<64x128xf32>
    %51 = arith.addf %48, %50 : vector<64x128xf32>
    %cst_26 = arith.constant 0.000000e+00 : f32
    %52 = vector.broadcast %cst_26 : f32 to vector<64x128xf32>
    %53 = arith.maximumf %51, %52 : vector<64x128xf32>
    %c1_i32_27 = arith.constant 1 : i32
    %54 = tpu.dynamic_rotate %53 by %c1_i32_27 dim 1 : vector<64x128xf32>, i32 -> vector<64x128xf32>
    %55 = vector.broadcast %0 : vector<1x128xf32> to vector<64x128xf32>
    %56 = arith.mulf %54, %55 : vector<64x128xf32>
    %c127_i32_28 = arith.constant 127 : i32
    %57 = tpu.dynamic_rotate %53 by %c127_i32_28 dim 1 : vector<64x128xf32>, i32 -> vector<64x128xf32>
    %58 = vector.broadcast %1 : vector<1x128xf32> to vector<64x128xf32>
    %59 = arith.mulf %57, %58 : vector<64x128xf32>
    %60 = tpu.concatenate %56, %53, %59 in 0 : vector<64x128xf32>, vector<64x128xf32>, vector<64x128xf32> -> vector<192x128xf32>
    %c0_29 = arith.constant 0 : index
    %c0_30 = arith.constant 0 : index
    %61 = vector.load %arg10[%c0_29, %c0_30] : memref<128x192xf32, #tpu.memory_space<vmem>>, vector<128x192xf32>
    %cst_31 = arith.constant dense<0.000000e+00> : vector<128x128xf32>
    %62 = tpu.matmul %61, %60, %cst_31 {dimension_numbers = #tpu.dot_dimension_numbers<[1], [0], [0], [1], [0, 0, 1, 1], [], []>} : vector<128x192xf32>, vector<192x128xf32>, vector<128x128xf32> -> vector<128x128xf32>
    %c0_32 = arith.constant 0 : index
    %c0_33 = arith.constant 0 : index
    %63 = vector.load %arg11[%c0_32, %c0_33] : memref<128x1xf32, #tpu.memory_space<vmem>>, vector<128x1xf32>
    %64 = vector.broadcast %63 : vector<128x1xf32> to vector<128x128xf32>
    %65 = arith.addf %62, %64 : vector<128x128xf32>
    %cst_34 = arith.constant 0.000000e+00 : f32
    %66 = vector.broadcast %cst_34 : f32 to vector<128x128xf32>
    %67 = arith.maximumf %65, %66 : vector<128x128xf32>
    %c1_i32_35 = arith.constant 1 : i32
    %68 = tpu.dynamic_rotate %67 by %c1_i32_35 dim 1 : vector<128x128xf32>, i32 -> vector<128x128xf32>
    %69 = vector.broadcast %0 : vector<1x128xf32> to vector<128x128xf32>
    %70 = arith.mulf %68, %69 : vector<128x128xf32>
    %c127_i32_36 = arith.constant 127 : i32
    %71 = tpu.dynamic_rotate %67 by %c127_i32_36 dim 1 : vector<128x128xf32>, i32 -> vector<128x128xf32>
    %72 = vector.broadcast %1 : vector<1x128xf32> to vector<128x128xf32>
    %73 = arith.mulf %71, %72 : vector<128x128xf32>
    %74 = tpu.concatenate %70, %67, %73 in 0 : vector<128x128xf32>, vector<128x128xf32>, vector<128x128xf32> -> vector<384x128xf32>
    %c0_37 = arith.constant 0 : index
    %c0_38 = arith.constant 0 : index
    %75 = vector.load %arg12[%c0_37, %c0_38] : memref<1x384xf32, #tpu.memory_space<vmem>>, vector<1x384xf32>
    %cst_39 = arith.constant dense<0.000000e+00> : vector<1x128xf32>
    %76 = tpu.matmul %75, %74, %cst_39 {dimension_numbers = #tpu.dot_dimension_numbers<[1], [0], [0], [1], [0, 0, 1, 1], [], []>} : vector<1x384xf32>, vector<384x128xf32>, vector<1x128xf32> -> vector<1x128xf32>
    %c0_40 = arith.constant 0 : index
    %c0_41 = arith.constant 0 : index
    %77 = vector.load %arg13[%c0_40, %c0_41] : memref<1x1xf32, #tpu.memory_space<vmem>>, vector<1x1xf32>
    %78 = vector.broadcast %77 : vector<1x1xf32> to vector<1x128xf32>
    %79 = arith.addf %76, %78 : vector<1x128xf32>
    %c0_42 = arith.constant 0 : index
    %c0_43 = arith.constant 0 : index
    %80 = vector.load %arg14[%c0_42, %c0_43] : memref<1x128xf32, #tpu.memory_space<vmem>>, vector<1x128xf32>
    tpu.vector_store %arg14[%c0_42, %c0_43], %79 {strides = array<i32>} : memref<1x128xf32, #tpu.memory_space<vmem>>, vector<1x128xf32>,
    return
  }
  func.func @transform_0(%arg0: i32) -> (i32, i32) {
    %c0_i32 = arith.constant 0 : i32
    %c0_i32_0 = arith.constant 0 : i32
    %c0_i32_1 = arith.constant 0 : i32
    return %c0_i32, %c0_i32_0 : i32, i32
  }
  func.func @transform_1(%arg0: i32) -> (i32, i32) {
    %c0_i32 = arith.constant 0 : i32
    %c0_i32_0 = arith.constant 0 : i32
    %c0_i32_1 = arith.constant 0 : i32
    return %c0_i32, %c0_i32_0 : i32, i32
  }
  func.func @transform_2(%arg0: i32) -> (i32, i32) {
    %c0_i32 = arith.constant 0 : i32
    %c0_i32_0 = arith.constant 0 : i32
    %c0_i32_1 = arith.constant 0 : i32
    return %c0_i32, %c0_i32_0 : i32, i32
  }
  func.func @transform_3(%arg0: i32) -> (i32, i32) {
    %c0_i32 = arith.constant 0 : i32
    %c0_i32_0 = arith.constant 0 : i32
    %c0_i32_1 = arith.constant 0 : i32
    return %c0_i32, %c0_i32_0 : i32, i32
  }
  func.func @transform_4(%arg0: i32) -> (i32, i32) {
    %c0_i32 = arith.constant 0 : i32
    %c0_i32_0 = arith.constant 0 : i32
    %c0_i32_1 = arith.constant 0 : i32
    return %c0_i32, %c0_i32_0 : i32, i32
  }
  func.func @transform_5(%arg0: i32) -> (i32, i32) {
    %c0_i32 = arith.constant 0 : i32
    %c0_i32_0 = arith.constant 0 : i32
    %c0_i32_1 = arith.constant 0 : i32
    return %c0_i32, %c0_i32_0 : i32, i32
  }
  func.func @transform_6(%arg0: i32) -> (i32, i32) {
    %c0_i32 = arith.constant 0 : i32
    %c0_i32_0 = arith.constant 0 : i32
    %c0_i32_1 = arith.constant 0 : i32
    return %c0_i32, %c0_i32_0 : i32, i32
  }
  func.func @transform_7(%arg0: i32) -> (i32, i32) {
    %c0_i32 = arith.constant 0 : i32
    %c0_i32_0 = arith.constant 0 : i32
    %c0_i32_1 = arith.constant 0 : i32
    return %c0_i32, %c0_i32_0 : i32, i32
  }
  func.func @transform_8(%arg0: i32) -> (i32, i32) {
    %c0_i32 = arith.constant 0 : i32
    %c0_i32_0 = arith.constant 0 : i32
    %c0_i32_1 = arith.constant 0 : i32
    return %c0_i32, %c0_i32_0 : i32, i32
  }
  func.func @transform_9(%arg0: i32) -> (i32, i32) {
    %c0_i32 = arith.constant 0 : i32
    %c0_i32_0 = arith.constant 0 : i32
    %c0_i32_1 = arith.constant 0 : i32
    return %c0_i32, %c0_i32_0 : i32, i32
  }
  func.func @transform_10(%arg0: i32) -> (i32, i32) {
    %c0_i32 = arith.constant 0 : i32
    %c0_i32_0 = arith.constant 0 : i32
    %c0_i32_1 = arith.constant 0 : i32
    return %c0_i32, %c0_i32_0 : i32, i32
  }
  func.func @transform_11(%arg0: i32) -> (i32, i32) {
    %c0_i32 = arith.constant 0 : i32
    %c0_i32_0 = arith.constant 0 : i32
    %c0_i32_1 = arith.constant 0 : i32
    return %c0_i32, %c0_i32_0 : i32, i32
  }
  func.func @transform_12(%arg0: i32) -> (i32, i32) {
    %c0_i32 = arith.constant 0 : i32
    %c0_i32_0 = arith.constant 0 : i32
    %c0_i32_1 = arith.constant 0 : i32
    return %c0_i32, %c0_i32_0 : i32, i32
  }
  func.func @transform_13(%arg0: i32) -> (i32, i32) {
    %c0_i32 = arith.constant 0 : i32
    %c0_i32_0 = arith.constant 0 : i32
    %c0_i32_1 = arith.constant 0 : i32
    return %c0_i32, %c0_i32_0 : i32, i32
  }
}

</mosaic_0001>

<bundles_post_ra>
// kernel: tpu_custom_call.1
= control target key start
LH: loop header
LB: loop body
LE: loop exit
PB: predicated region body
PF: predicated region fallthrough
CT: control target
= control target key end

     0   :  { %s1583_s0 = inlined_call_operand.vmem [shape: f32[1,128], index: 0, kind: input, shape index: {}]   ;;  %s1584_s1 = inlined_call_operand.vmem [shape: f32[1,128], index: 1, kind: input, shape index: {}]   ;;  %s1585_s2 = inlined_call_operand.vmem [shape: f32[1,128], index: 2, kind: input, shape index: {}]   ;;  %s1586_s3 = inlined_call_operand.vmem [shape: f32[16,3], index: 3, kind: input, shape index: {}]   ;;  %s1587_s4 = inlined_call_operand.vmem [shape: f32[16,1], index: 4, kind: input, shape index: {}]   ;;  %s1588_s5 = inlined_call_operand.vmem [shape: f32[32,48], index: 5, kind: input, shape index: {}]   ;;  %s1589_s6 = inlined_call_operand.vmem [shape: f32[32,1], index: 6, kind: input, shape index: {}]   ;;  %s1590_s7 = inlined_call_operand.vmem [shape: f32[64,96], index: 7, kind: input, shape index: {}]   ;;  %s1591_s8 = inlined_call_operand.vmem [shape: f32[64,1], index: 8, kind: input, shape index: {}]   ;;  %s1592_s9 = inlined_call_operand.vmem [shape: f32[128,192], index: 9, kind: input, shape index: {}]   ;;  %s1593_s10 = inlined_call_operand.vmem [shape: f32[128,1], index: 10, kind: input, shape index: {}]   ;;  %s1594_s11 = inlined_call_operand.vmem [shape: f32[1,384], index: 11, kind: input, shape index: {}]   ;;  %s1595_s12 = inlined_call_operand.<no memory space> [shape: f32[1,1], index: 12, kind: input, shape index: {}]   ;;  %s1596_s13 = inlined_call_operand.hbm [shape: f32[1,128], index: 13, kind: output, shape index: {}]  }
   0x1   :  { %v18_v0 = vstv %s1595_s12 }
   0x2   :  { %19 = vst [vmem:[#allocation2] sm:$0x1] %v18_v0 }
   0x3   :  { %v49_v1 = vld [vmem:[%s1583_s0] sm:$0x1]  ;;  %v57_v2 = vld [vmem:[%s1586_s3 + $0x8] sm:$0xff]  ;;  %v1010_v3 = vmov 0   ;;  %s1011_s14 = smov 1   ;;  %v1012_v4 = vmov 2  }
   0x4   :  { %970 = vset.pattern.permute.xlu1 %v1010_v3  ;;  %50 = vrot.lane.b32.xlu0 %v49_v1, %s1011_s14 }
   0x5   :  { %65 = vperm.xlu1 %970, %v57_v2   ;;  %974 = vset.pattern.permute.xlu0 %v1012_v4 }
   0x6   :  { %20 = vsyncpa [#allocation4], 0  ;;  %v56_v5 = vld [vmem:[%s1586_s3] sm:$0xff]  ;;  %972 = vset.pattern.permute.xlu2 %v1010_v3  ;;  %s1013_s16 = smov 127   ;;  %v1014_v6 = vmov 1   ;;  %v100_v7 = vld [vmem:[%s1587_s4 + $0x8] sm:$0xff] }
   0x7   :  { %60 = vperm.xlu2 %972, %v56_v5   ;;  %v99_v8 = vld [vmem:[%s1587_s4] sm:$0xff]  ;;  %v139_v39 = vld [vmem:[%s1589_s6 + $0x10] sm:$0xff]  ;;  %v138_v42 = vld [vmem:[%s1589_s6 + $0x8] sm:$0xff]  ;;  %vm161_vm0 = vcmask 392192   ;;  %vm287_vm1 = vcmask 785408   ;;  %vm537_vm2 = vcmask 523264  }
   0x8   :  { %v47_v12 = vld [vmem:[%s1584_s1] sm:$0x1]  ;;  %v140_v49 = vld [vmem:[%s1589_s6 + $0x18] sm:$0xff]  ;;  %v134_v55 = vld [vmem:[%s1588_s5 + $0x8] sm:$0xff]  ;;  %s911_s20 = sshll.u32 %s1596_s13, 4  ;;  %s912_s20 = int_to_ptr.hbm [resolvable:$true] %s911_s20 }
   0x9   :  { %v48_v13 = vld [vmem:[%s1585_s2] sm:$0x1]  ;;  %v135_v56 = vld [vmem:[%s1588_s5 + $0x10] sm:$0xff]  ;;  %v136_v57 = vld [vmem:[%s1588_s5 + $0x18] sm:$0xff] }
   0xa   :  { %v981_v18 = vld [vmem:[%s1583_s0] ss:$0 sm:$0xff] }
   0xb   :  { %v137_v41 = vld [vmem:[%s1589_s6] sm:$0xff] }
   0xc   :  { %53 = vrot.lane.b32.xlu0 %v49_v1, %s1013_s16  ;;  %v1131_v43 = vld [vmem:[%s1585_s2] ss:$0 sm:$0xff] }
   0xd   :  { %971 = vset.pattern.permute.xlu1 %v1014_v6  ;;  %v1141_v50 = vld [vmem:[%s1584_s1] ss:$0 sm:$0xff] }
   0xe   :  { %76 = vperm.xlu1 %971, %v57_v2   ;;  %v133_v54 = vld [vmem:[%s1588_s5] sm:$0xff] }
   0xf   :  { %973 = vset.pattern.permute.xlu2 %v1014_v6  ;;  %v246_v6 = vld [vmem:[%s1591_s8 + $0x38] sm:$0xff] }
  0x10   :  { %72 = vperm.xlu2 %973, %v56_v5  }
  0x14   :  { %91 = vperm.xlu0 %974, %v57_v2  }
  0x16   :  { %975 = vset.pattern.permute.xlu1 %v1012_v4 }
  0x17   :  { %87 = vperm.xlu1 %975, %v56_v5  }
  0x18   :  { %976 = vset.pattern.permute.xlu2 %v1010_v3 }
  0x19   :  { %108 = vperm.xlu2 %976, %v100_v7  }
  0x1c   :  { %978 = vset.pattern.permute.xlu0 %v1010_v3 }
  0x1f   :  { %977 = vset.pattern.permute.xlu1 %v1010_v3 }
  0x20   :  { %103 = vperm.xlu1 %977, %v99_v8  }
  0x61   :  { %v61_v9 = vpop.permute.xlu2 %60 }
  0x6a   :  { %v73_v16 = vpop.permute.xlu2 %72 }
  0x6b   :  { %v82_v31 = vmul.f32 %v981_v18, %v73_v16  ;;  %v242_v16 = vld [vmem:[%s1591_s8 + $0x18] sm:$0xff] }
  0x73   :  { %v109_v27 = vpop.permute.xlu2 %108 }
  0x76   :  { %v51_v10 = vpop.permute.xlu0 %50 }
  0x77   :  { %v66_v11 = vpop.permute.xlu1 %65  ;;  %v52_v14 = vmul.f32 %v51_v10, %v47_v12  ;;  %v243_v10 = vld [vmem:[%s1591_s8 + $0x20] sm:$0xff]  ;;  %v240_v12 = vld [vmem:[%s1591_s8 + $0x8] sm:$0xff] }
  0x79   :  { %v68_v20 = vperm.slane %v52_v14, 0  ;;  %v241_v14 = vld [vmem:[%s1591_s8 + $0x10] sm:$0xff] }
  0x7b   :  { %v70_v23 = vmul.f32 %v68_v20, %v66_v11  ;;  %v69_v30 = vmul.f32 %v68_v20, %v61_v9 }
  0x7d   :  { %v84_v35 = vadd.f32 %v82_v31, %v69_v30 }
  0x7e   :  { %v54_v15 = vpop.permute.xlu0 %53 }
  0x7f   :  { %v55_v17 = vmul.f32 %v54_v15, %v48_v13  ;;  %v244_v13 = vld [vmem:[%s1591_s8 + $0x28] sm:$0xff]  ;;  %v245_v15 = vld [vmem:[%s1591_s8 + $0x30] sm:$0xff] }
  0x80   :  { %v77_v19 = vpop.permute.xlu1 %76 }
  0x81   :  { %v94_v21 = vperm.slane %v55_v17, 0  ;;  %v83_v22 = vmul.f32 %v981_v18, %v77_v19  ;;  %v239_v17 = vld [vmem:[%s1591_s8] sm:$0xff] }
  0x83   :  { %v85_v25 = vadd.f32 %v83_v22, %v70_v23 }
  0x86   :  { %v92_v24 = vpop.permute.xlu0 %91 }
  0x87   :  { %v96_v26 = vmul.f32 %v94_v21, %v92_v24 }
  0x89   :  { %v88_v28 = vpop.permute.xlu1 %87  ;;  %v98_v29 = vadd.f32 %v96_v26, %v85_v25 }
  0x8a   :  { %v95_v33 = vmul.f32 %v94_v21, %v88_v28 }
  0x8b   :  { %v112_v32 = vadd.f32 %v109_v27, %v98_v29 }
  0x8c   :  { %v97_v36 = vadd.f32 %v95_v33, %v84_v35  ;;  %v232_v35 = vld [vmem:[%s1590_s7 + $0x8] sm:$0xff] }
  0x8d   :  { %v114_v34 = vmax.f32 %v112_v32, 0.0 }
  0x8f   :  { %117 = vrot.lane.b32.xlu1 %v114_v34, %s1011_s14  ;;  %126 = vrot.lane.b32.xlu2 %v114_v34, %s1013_s16 }
  0x92   :  { %v104_v37 = vpop.permute.xlu1 %103 }
  0x93   :  { %v111_v38 = vadd.f32 %v104_v37, %v97_v36  ;;  %v233_v36 = vld [vmem:[%s1590_s7 + $0x10] sm:$0xff]  ;;  %v234_v37 = vld [vmem:[%s1590_s7 + $0x18] sm:$0xff] }
  0x95   :  { %v113_v40 = vmax.f32 %v111_v38, 0.0  ;;  %v235_v38 = vld [vmem:[%s1590_s7 + $0x20] sm:$0xff] }
  0x97   :  { %153 = vperm.xlu1 %977, %v139_v39   ;;  %115 = vrot.lane.b32.xlu2 %v113_v40, %s1011_s14  ;;  %v236_v39 = vld [vmem:[%s1590_s7 + $0x28] sm:$0xff] }
  0x98   :  { %124 = vrot.lane.b32.xlu0 %v113_v40, %s1013_s16 }
  0x9f   :  { %143 = vperm.xlu1 %977, %v137_v41   ;;  %148 = vperm.xlu2 %976, %v138_v42   ;;  %v238_v41 = vld [vmem:[%s1590_s7 + $0x38] sm:$0xff] }
  0xa0   :  { %158 = vperm.xlu0 %978, %v140_v49  }
  0xe9   :  { %v127_v44 = vpop.permute.xlu2 %126 }
  0xea   :  { %v132_v45 = vmul.f32 %v1131_v43, %v127_v44 }
  0xec   :  { %184 = vmatpush.msra.mxu0 %v132_v45 }
  0xf1   :  { %v116_v51 = vpop.permute.xlu2 %115 }
  0xf2   :  { %v122_v53 = vmul.f32 %v1141_v50, %v116_v51 }
  0xf9   :  { %v149_v59 = vpop.permute.xlu2 %148 }
 0x101   :  { %v118_v48 = vpop.permute.xlu1 %117 }
 0x102   :  { %v123_v52 = vmul.f32 %v1141_v50, %v118_v48 }
 0x109   :  { %v154_v63 = vpop.permute.xlu1 %153 }
 0x10a   :  { %v125_v46 = vpop.permute.xlu0 %124 }
 0x10b   :  { %v131_v47 = vmul.f32 %v1131_v43, %v125_v46 }
 0x10d   :  { %185 = vmatpush.msra.mxu0 %v131_v47 }
 0x10f   :  { %186 = vmatpush.msra.mxu0 %v114_v34  ;;  %v231_v34 = vld [vmem:[%s1590_s7] sm:$0xff] }
 0x111   :  { %187 = vmatpush.msra.mxu0 %v113_v40  ;;  %v144_v8 = vpop.permute.xlu1 %143  ;;  %v237_v40 = vld [vmem:[%s1590_s7 + $0x30] sm:$0xff] }
 0x112   :  { %v159_v3 = vpop.permute.xlu0 %158 }
 0x113   :  { %188 = vmatpush.msra.mxu0 %v123_v52 }
 0x115   :  { %189 = vmatpush.msra.mxu0 %v122_v53 }
 0x116   :  { %920 = vmatmul.msk.f32.vlgmr.msra.gmra.mxu0 %vm161_vm0, %v133_v54 }
 0x11e   :  { %921 = vmatmul.msk.f32.gmra.mxu0 %vm161_vm0, %v134_v55 }
 0x126   :  { %922 = vmatmul.msk.f32.gmra.mxu0 %vm161_vm0, %v135_v56 }
 0x12e   :  { %923 = vmatmul.msk.f32.gmra.mxu0 %vm161_vm0, %v136_v57 }
 0x193   :  { %v191_v58 = vpop.f32.mrf.mxu0 }
 0x194   :  { %v192_v9 = vadd.f32 %v191_v58, %v144_v8 }
 0x196   :  { %v203_v11 = vmax.f32 %v192_v9, 0.0 }
 0x19b   :  { %v194_v60 = vpop.f32.mrf.mxu0 }
 0x19c   :  { %v195_v61 = vadd.f32 %v194_v60, %v149_v59 }
 0x19e   :  { %v204_v62 = vmax.f32 %v195_v61, 0.0 }
 0x1a0   :  { %221 = vrot.lane.b32.xlu1 %v204_v62, %s1013_s16 }
 0x1a3   :  { %v197_v0 = vpop.f32.mrf.mxu0 }
 0x1a4   :  { %v198_v1 = vadd.f32 %v197_v0, %v154_v63 }
 0x1a6   :  { %v205_v2 = vmax.f32 %v198_v1, 0.0 }
 0x1a8   :  { %223 = vrot.lane.b32.xlu0 %v205_v2, %s1013_s16  ;;  %211 = vrot.lane.b32.xlu1 %v205_v2, %s1011_s14 }
 0x1ab   :  { %v200_v4 = vpop.f32.mrf.mxu0 }
 0x1ac   :  { %v201_v5 = vadd.f32 %v200_v4, %v159_v3 }
 0x1ae   :  { %v206_v7 = vmax.f32 %v201_v5, 0.0 }
 0x1b0   :  { %284 = vperm.xlu1 %977, %v246_v6   ;;  %213 = vrot.lane.b32.xlu0 %v206_v7, %s1011_s14 }
 0x1b1   :  { %225 = vrot.lane.b32.xlu2 %v206_v7, %s1013_s16 }
 0x1b8   :  { %269 = vperm.xlu1 %977, %v243_v10   ;;  %207 = vrot.lane.b32.xlu0 %v203_v11, %s1011_s14 }
 0x1b9   :  { %219 = vrot.lane.b32.xlu2 %v203_v11, %s1013_s16 }
 0x1c0   :  { %254 = vperm.xlu1 %977, %v240_v12   ;;  %274 = vperm.xlu0 %978, %v244_v13   ;;  %v455_v12 = vld [vmem:[%s1593_s10 + $0x70] sm:$0xff]  ;;  %v456_v13 = vld [vmem:[%s1593_s10 + $0x78] sm:$0xff] }
 0x1c1   :  { %209 = vrot.lane.b32.xlu2 %v204_v62, %s1011_s14 }
 0x1c8   :  { %259 = vperm.xlu0 %978, %v241_v14   ;;  %v452_v14 = vld [vmem:[%s1593_s10 + $0x58] sm:$0xff] }
 0x1c9   :  { %279 = vperm.xlu2 %976, %v245_v15   ;;  %v453_v15 = vld [vmem:[%s1593_s10 + $0x60] sm:$0xff] }
 0x1d1   :  { %264 = vperm.xlu2 %976, %v242_v16   ;;  %v449_v16 = vld [vmem:[%s1593_s10 + $0x40] sm:$0xff] }
 0x1d9   :  { %249 = vperm.xlu2 %976, %v239_v17   ;;  %v454_v17 = vld [vmem:[%s1593_s10 + $0x68] sm:$0xff] }
 0x20b   :  { %v226_v18 = vpop.permute.xlu2 %225 }
 0x20c   :  { %v230_v19 = vmul.f32 %v1131_v43, %v226_v18  ;;  %v450_v18 = vld [vmem:[%s1593_s10 + $0x48] sm:$0xff] }
 0x20e   :  { %316 = vmatpush.msra.mxu1 %v230_v19  ;;  %v446_v19 = vld [vmem:[%s1593_s10 + $0x28] sm:$0xff] }
 0x212   :  { %v222_v20 = vpop.permute.xlu1 %221 }
 0x213   :  { %v220_v23 = vpop.permute.xlu2 %219  ;;  %v228_v24 = vmul.f32 %v1131_v43, %v222_v20  ;;  %v451_v20 = vld [vmem:[%s1593_s10 + $0x50] sm:$0xff] }
 0x214   :  { %v227_v25 = vmul.f32 %v1131_v43, %v220_v23  ;;  %v448_v23 = vld [vmem:[%s1593_s10 + $0x38] sm:$0xff] }
 0x21a   :  { %v224_v21 = vpop.permute.xlu0 %223  ;;  %v212_v27 = vpop.permute.xlu1 %211 }
 0x21b   :  { %v229_v22 = vmul.f32 %v1131_v43, %v224_v21  ;;  %v210_v29 = vpop.permute.xlu2 %209  ;;  %v217_v30 = vmul.f32 %v1141_v50, %v212_v27  ;;  %v447_v21 = vld [vmem:[%s1593_s10 + $0x30] sm:$0xff] }
 0x21c   :  { %v216_v32 = vmul.f32 %v1141_v50, %v210_v29 }
 0x21d   :  { %317 = vmatpush.msra.mxu1 %v229_v22  ;;  %v443_v22 = vld [vmem:[%s1593_s10 + $0x10] sm:$0xff] }
 0x21f   :  { %318 = vmatpush.msra.mxu1 %v228_v24  ;;  %v444_v24 = vld [vmem:[%s1593_s10 + $0x18] sm:$0xff] }
 0x221   :  { %319 = vmatpush.msra.mxu1 %v227_v25  ;;  %v445_v25 = vld [vmem:[%s1593_s10 + $0x20] sm:$0xff] }
 0x222   :  { %v214_v26 = vpop.permute.xlu0 %213  ;;  %v285_v54 = vpop.permute.xlu1 %284 }
 0x223   :  { %320 = vmatpush.msra.mxu1 %v206_v7  ;;  %v218_v28 = vmul.f32 %v1141_v50, %v214_v26  ;;  %v280_v52 = vpop.permute.xlu2 %279  ;;  %v441_v26 = vld [vmem:[%s1593_s10] sm:$0xff] }
 0x225   :  { %321 = vmatpush.msra.mxu1 %v205_v2 }
 0x227   :  { %322 = vmatpush.msra.mxu1 %v204_v62 }
 0x229   :  { %323 = vmatpush.msra.mxu1 %v203_v11 }
 0x22a   :  { %v208_v31 = vpop.permute.xlu0 %207  ;;  %v270_v62 = vpop.permute.xlu1 %269 }
 0x22b   :  { %324 = vmatpush.msra.mxu1 %v218_v28  ;;  %v215_v33 = vmul.f32 %v1141_v50, %v208_v31  ;;  %v265_v61 = vpop.permute.xlu2 %264  ;;  %v442_v28 = vld [vmem:[%s1593_s10 + $0x8] sm:$0xff] }
 0x22d   :  { %325 = vmatpush.msra.mxu1 %v217_v30 }
 0x22f   :  { %326 = vmatpush.msra.mxu1 %v216_v32 }
 0x231   :  { %327 = vmatpush.msra.mxu1 %v215_v33 }
 0x232   :  { %924 = vmatmul.msk.f32.vlgmr.msra.gmra.mxu1 %vm287_vm1, %v231_v34  ;;  %v275_v48 = vpop.permute.xlu0 %274  ;;  %v255_v8 = vpop.permute.xlu1 %254 }
 0x233   :  { %v250_v5 = vpop.permute.xlu2 %249 }
 0x23a   :  { %925 = vmatmul.msk.f32.gmra.mxu1 %vm287_vm1, %v232_v35  ;;  %v260_v55 = vpop.permute.xlu0 %259 }
 0x242   :  { %926 = vmatmul.msk.f32.gmra.mxu1 %vm287_vm1, %v233_v36 }
 0x24a   :  { %927 = vmatmul.msk.f32.gmra.mxu1 %vm287_vm1, %v234_v37 }
 0x252   :  { %928 = vmatmul.msk.f32.gmra.mxu1 %vm287_vm1, %v235_v38 }
 0x25a   :  { %929 = vmatmul.msk.f32.gmra.mxu1 %vm287_vm1, %v236_v39 }
 0x262   :  { %930 = vmatmul.msk.f32.gmra.mxu1 %vm287_vm1, %v237_v40 }
 0x26a   :  { %931 = vmatmul.msk.f32.gmra.mxu1 %vm287_vm1, %v238_v41 }
 0x2af   :  { %v329_v42 = vpop.f32.mrf.mxu1 }
 0x2b0   :  { %v330_v6 = vadd.f32 %v329_v42, %v250_v5  ;;  %v419_v5 = vld [vmem:[%s1592_s9 + $0x50] sm:$0xff] }
 0x2b2   :  { %v353_v10 = vmax.f32 %v330_v6, 0.0  ;;  %v418_v6 = vld [vmem:[%s1592_s9 + $0x48] sm:$0xff] }
 0x2b7   :  { %v332_v44 = vpop.f32.mrf.mxu1 }
 0x2b8   :  { %v333_v9 = vadd.f32 %v332_v44, %v255_v8  ;;  %v421_v8 = vld [vmem:[%s1592_s9 + $0x60] sm:$0xff] }
 0x2ba   :  { %v354_v11 = vmax.f32 %v333_v9, 0.0  ;;  %v420_v9 = vld [vmem:[%s1592_s9 + $0x58] sm:$0xff] }
 0x2bf   :  { %v335_v45 = vpop.f32.mrf.mxu1 }
 0x2c0   :  { %v336_v56 = vadd.f32 %v335_v45, %v260_v55 }
 0x2c2   :  { %v355_v59 = vmax.f32 %v336_v56, 0.0 }
 0x2c7   :  { %v338_v46 = vpop.f32.mrf.mxu1 }
 0x2c8   :  { %v339_v63 = vadd.f32 %v338_v46, %v265_v61  ;;  %v414_v61 = vld [vmem:[%s1592_s9 + $0x28] sm:$0xff] }
 0x2ca   :  { %v356_v3 = vmax.f32 %v339_v63, 0.0 }
 0x2cf   :  { %v341_v47 = vpop.f32.mrf.mxu1 }
 0x2d0   :  { %v342_v4 = vadd.f32 %v341_v47, %v270_v62  ;;  %v410_v47 = vld [vmem:[%s1592_s9 + $0x8] sm:$0xff] }
 0x2d2   :  { %v357_v7 = vmax.f32 %v342_v4, 0.0  ;;  %v411_v4 = vld [vmem:[%s1592_s9 + $0x10] sm:$0xff] }
 0x2d7   :  { %v344_v49 = vpop.f32.mrf.mxu1 }
 0x2d8   :  { %v345_v51 = vadd.f32 %v344_v49, %v275_v48 }
 0x2da   :  { %v358_v53 = vmax.f32 %v345_v51, 0.0 }
 0x2dc   :  { %395 = vrot.lane.b32.xlu2 %v358_v53, %s1013_s16 }
 0x2df   :  { %v347_v57 = vpop.f32.mrf.mxu1 }
 0x2e0   :  { %v348_v58 = vadd.f32 %v347_v57, %v280_v52 }
 0x2e2   :  { %v359_v60 = vmax.f32 %v348_v58, 0.0 }
 0x2e4   :  { %397 = vrot.lane.b32.xlu1 %v359_v60, %s1013_s16  ;;  %389 = vrot.lane.b32.xlu2 %v355_v59, %s1013_s16 }
 0x2e7   :  { %v350_v0 = vpop.f32.mrf.mxu1 }
 0x2e8   :  { %v351_v1 = vadd.f32 %v350_v0, %v285_v54  ;;  %v412_v54 = vld [vmem:[%s1592_s9 + $0x18] sm:$0xff] }
 0x2ea   :  { %v360_v2 = vmax.f32 %v351_v1, 0.0  ;;  %v409_v1 = vld [vmem:[%s1592_s9] sm:$0xff] }
 0x2ec   :  { %399 = vrot.lane.b32.xlu0 %v360_v2, %s1013_s16  ;;  %586 = vmatpush.msrb.mxu0 %v360_v2 }
 0x2ed   :  { %948 = vmatpush.msra.mxu2 %v360_v2  ;;  %391 = vrot.lane.b32.xlu1 %v356_v3, %s1013_s16 }
 0x2ee   :  { %375 = vrot.lane.b32.xlu2 %v360_v2, %s1011_s14  ;;  %587 = vmatpush.msrb.mxu0 %v359_v60  ;;  %v417_v2 = vld [vmem:[%s1592_s9 + $0x40] sm:$0xff] }
 0x2ef   :  { %949 = vmatpush.msra.mxu2 %v359_v60 }
 0x2f0   :  { %588 = vmatpush.msrb.mxu0 %v358_v53 }
 0x2f1   :  { %950 = vmatpush.msra.mxu2 %v358_v53 }
 0x2f2   :  { %589 = vmatpush.msrb.mxu0 %v357_v7 }
 0x2f3   :  { %951 = vmatpush.msra.mxu2 %v357_v7 }
 0x2f4   :  { %393 = vrot.lane.b32.xlu0 %v357_v7, %s1013_s16  ;;  %590 = vmatpush.msrb.mxu0 %v356_v3 }
 0x2f5   :  { %385 = vrot.lane.b32.xlu1 %v353_v10, %s1013_s16  ;;  %952 = vmatpush.msra.mxu2 %v356_v3 }
 0x2f6   :  { %369 = vrot.lane.b32.xlu2 %v357_v7, %s1011_s14  ;;  %591 = vmatpush.msrb.mxu0 %v355_v59  ;;  %v413_v7 = vld [vmem:[%s1592_s9 + $0x20] sm:$0xff] }
 0x2f7   :  { %953 = vmatpush.msra.mxu2 %v355_v59 }
 0x2f8   :  { %592 = vmatpush.msrb.mxu0 %v354_v11 }
 0x2f9   :  { %954 = vmatpush.msra.mxu2 %v354_v11 }
 0x2fa   :  { %593 = vmatpush.msrb.mxu0 %v353_v10 }
 0x2fb   :  { %955 = vmatpush.msra.mxu2 %v353_v10 }
 0x2fc   :  { %387 = vrot.lane.b32.xlu0 %v354_v11, %s1013_s16 }
 0x2fd   :  { %371 = vrot.lane.b32.xlu1 %v358_v53, %s1011_s14 }
 0x2fe   :  { %363 = vrot.lane.b32.xlu2 %v354_v11, %s1011_s14  ;;  %v423_v11 = vld [vmem:[%s1592_s9 + $0x70] sm:$0xff] }
 0x304   :  { %373 = vrot.lane.b32.xlu0 %v359_v60, %s1011_s14 }
 0x305   :  { %365 = vrot.lane.b32.xlu1 %v355_v59, %s1011_s14 }
 0x306   :  { %529 = vperm.xlu2 %976, %v455_v12   ;;  %v422_v12 = vld [vmem:[%s1592_s9 + $0x68] sm:$0xff] }
 0x30c   :  { %367 = vrot.lane.b32.xlu0 %v356_v3, %s1011_s14  ;;  %v416_v3 = vld [vmem:[%s1592_s9 + $0x38] sm:$0xff] }
 0x30d   :  { %534 = vperm.xlu1 %977, %v456_v13   ;;  %v425_v13 = vld [vmem:[%s1592_s9 + $0x80] sm:$0xff] }
 0x30e   :  { %514 = vperm.xlu2 %976, %v452_v14   ;;  %v424_v14 = vld [vmem:[%s1592_s9 + $0x78] sm:$0xff] }
 0x314   :  { %361 = vrot.lane.b32.xlu0 %v353_v10, %s1011_s14  ;;  %v415_v10 = vld [vmem:[%s1592_s9 + $0x30] sm:$0xff] }
 0x315   :  { %519 = vperm.xlu1 %977, %v453_v15   ;;  %v427_v15 = vld [vmem:[%s1592_s9 + $0x90] sm:$0xff] }
 0x316   :  { %499 = vperm.xlu2 %976, %v449_v16   ;;  %v426_v16 = vld [vmem:[%s1592_s9 + $0x88] sm:$0xff] }
 0x31c   :  { %524 = vperm.xlu0 %978, %v454_v17   ;;  %v429_v17 = vld [vmem:[%s1592_s9 + $0xa0] sm:$0xff] }
 0x31d   :  { %504 = vperm.xlu1 %977, %v450_v18   ;;  %v428_v18 = vld [vmem:[%s1592_s9 + $0x98] sm:$0xff] }
 0x31e   :  { %484 = vperm.xlu2 %976, %v446_v19   ;;  %v431_v19 = vld [vmem:[%s1592_s9 + $0xb0] sm:$0xff] }
 0x324   :  { %509 = vperm.xlu0 %978, %v451_v20   ;;  %v430_v20 = vld [vmem:[%s1592_s9 + $0xa8] sm:$0xff] }
 0x325   :  { %489 = vperm.xlu1 %977, %v447_v21   ;;  %v433_v21 = vld [vmem:[%s1592_s9 + $0xc0] sm:$0xff] }
 0x326   :  { %469 = vperm.xlu2 %976, %v443_v22   ;;  %v432_v22 = vld [vmem:[%s1592_s9 + $0xb8] sm:$0xff] }
 0x32c   :  { %494 = vperm.xlu0 %978, %v448_v23   ;;  %v435_v23 = vld [vmem:[%s1592_s9 + $0xd0] sm:$0xff] }
 0x32d   :  { %474 = vperm.xlu1 %977, %v444_v24   ;;  %v434_v24 = vld [vmem:[%s1592_s9 + $0xc8] sm:$0xff] }
 0x334   :  { %479 = vperm.xlu0 %978, %v445_v25   ;;  %v437_v25 = vld [vmem:[%s1592_s9 + $0xe0] sm:$0xff] }
 0x335   :  { %459 = vperm.xlu1 %977, %v441_v26   ;;  %v436_v26 = vld [vmem:[%s1592_s9 + $0xd8] sm:$0xff] }
 0x336   :  { %v396_v27 = vpop.permute.xlu2 %395 }
 0x337   :  { %v406_v37 = vmul.f32 %v1131_v43, %v396_v27  ;;  %v439_v27 = vld [vmem:[%s1592_s9 + $0xf0] sm:$0xff] }
 0x33c   :  { %464 = vperm.xlu0 %978, %v442_v28   ;;  %v438_v28 = vld [vmem:[%s1592_s9 + $0xe8] sm:$0xff] }
 0x33e   :  { %v390_v29 = vpop.permute.xlu2 %389 }
 0x33f   :  { %v403_v42 = vmul.f32 %v1131_v43, %v390_v29  ;;  %v440_v29 = vld [vmem:[%s1592_s9 + $0xf8] sm:$0xff] }
 0x348   :  { %v376_v30 = vpop.permute.xlu2 %375 }
 0x349   :  { %v384_v31 = vmul.f32 %v1141_v50, %v376_v30 }
 0x34b   :  { %594 = vmatpush.msrb.mxu0 %v384_v31  ;;  %956 = vmatpush.msra.mxu2 %v384_v31 }
 0x350   :  { %v370_v49 = vpop.permute.xlu2 %369 }
 0x351   :  { %v381_v55 = vmul.f32 %v1141_v50, %v370_v49 }
 0x356   :  { %v398_v32 = vpop.permute.xlu1 %397 }
 0x357   :  { %v407_v36 = vmul.f32 %v1131_v43, %v398_v32 }
 0x358   :  { %v364_v59 = vpop.permute.xlu2 %363 }
 0x359   :  { %v378_v62 = vmul.f32 %v1141_v50, %v364_v59 }
 0x35e   :  { %v400_v33 = vpop.permute.xlu0 %399 }
 0x35f   :  { %v408_v34 = vmul.f32 %v1131_v43, %v400_v33  ;;  %v392_v35 = vpop.permute.xlu1 %391 }
 0x360   :  { %v404_v40 = vmul.f32 %v1131_v43, %v392_v35  ;;  %v1425_v32 = vpop.permute.xlu2 %529 }
 0x361   :  { %659 = vmatpush.msra.mxu3 %v408_v34 }
 0x363   :  { %660 = vmatpush.msra.mxu3 %v407_v36 }
 0x365   :  { %661 = vmatpush.msra.mxu3 %v406_v37 }
 0x366   :  { %v394_v38 = vpop.permute.xlu0 %393 }
 0x367   :  { %v405_v39 = vmul.f32 %v1131_v43, %v394_v38  ;;  %v386_v41 = vpop.permute.xlu1 %385 }
 0x368   :  { %v401_v46 = vmul.f32 %v1131_v43, %v386_v41  ;;  %v515_v37 = vpop.permute.xlu2 %514 }
 0x369   :  { %662 = vmatpush.msra.mxu3 %v405_v39 }
 0x36b   :  { %663 = vmatpush.msra.mxu3 %v404_v40 }
 0x36d   :  { %664 = vmatpush.msra.mxu3 %v403_v42 }
 0x36e   :  { %v388_v44 = vpop.permute.xlu0 %387 }
 0x36f   :  { %v402_v45 = vmul.f32 %v1131_v43, %v388_v44  ;;  %v372_v48 = vpop.permute.xlu1 %371 }
 0x370   :  { %v382_v53 = vmul.f32 %v1141_v50, %v372_v48  ;;  %v500_v42 = vpop.permute.xlu2 %499 }
 0x371   :  { %665 = vmatpush.msra.mxu3 %v402_v45 }
 0x373   :  { %666 = vmatpush.msra.mxu3 %v401_v46 }
 0x374   :  { %932 = vmatmul.msk.f32.vlgmr.msra.gmra.mxu3 %vm537_vm2, %v410_v47 }
 0x376   :  { %v374_v51 = vpop.permute.xlu0 %373 }
 0x377   :  { %v383_v52 = vmul.f32 %v1141_v50, %v374_v51  ;;  %v366_v56 = vpop.permute.xlu1 %365 }
 0x378   :  { %v379_v60 = vmul.f32 %v1141_v50, %v366_v56 }
 0x379   :  { %595 = vmatpush.msrb.mxu0 %v383_v52  ;;  %957 = vmatpush.msra.mxu2 %v383_v52  ;;  %v485_v52 = vpop.permute.xlu2 %484 }
 0x37b   :  { %596 = vmatpush.msrb.mxu0 %v382_v53  ;;  %958 = vmatpush.msra.mxu2 %v382_v53 }
 0x37c   :  { %933 = vmatmul.msk.f32.gmra.mxu3 %vm537_vm2, %v412_v54 }
 0x37d   :  { %597 = vmatpush.msrb.mxu0 %v381_v55  ;;  %959 = vmatpush.msra.mxu2 %v381_v55 }
 0x37e   :  { %v368_v57 = vpop.permute.xlu0 %367 }
 0x37f   :  { %v380_v58 = vmul.f32 %v1141_v50, %v368_v57  ;;  %v1429_v35 = vpop.permute.xlu1 %534 }
 0x381   :  { %598 = vmatpush.msrb.mxu0 %v380_v58  ;;  %960 = vmatpush.msra.mxu2 %v380_v58 }
 0x383   :  { %599 = vmatpush.msrb.mxu0 %v379_v60  ;;  %961 = vmatpush.msra.mxu2 %v379_v60 }
 0x384   :  { %934 = vmatmul.msk.f32.gmra.mxu3 %vm537_vm2, %v414_v61 }
 0x385   :  { %600 = vmatpush.msrb.mxu0 %v378_v62  ;;  %962 = vmatpush.msra.mxu2 %v378_v62 }
 0x386   :  { %v362_v63 = vpop.permute.xlu0 %361 }
 0x387   :  { %v377_v0 = vmul.f32 %v1141_v50, %v362_v63  ;;  %v520_v41 = vpop.permute.xlu1 %519 }
 0x389   :  { %601 = vmatpush.msrb.mxu0 %v377_v0  ;;  %963 = vmatpush.msra.mxu2 %v377_v0 }
 0x38a   :  { %602 = vmatmul.f32.vlgmr.msrb.gmra.mxu0 %v409_v1  ;;  %614 = vmatmul.f32.vlgmr.msra.gmra.mxu2 %v417_v2 }
 0x38c   :  { %935 = vmatmul.msk.f32.gmra.mxu3 %vm537_vm2, %v416_v3 }
 0x38e   :  { %v1421_v30 = vpop.permute.xlu0 %524 }
 0x38f   :  { %v505_v51 = vpop.permute.xlu1 %504 }
 0x392   :  { %605 = vmatmul.f32.gmra.mxu0 %v411_v4  ;;  %617 = vmatmul.f32.gmra.mxu2 %v419_v5 }
 0x394   :  { %936 = vmatmul.msk.f32.gmra.mxu3 %vm537_vm2, %v418_v6 }
 0x396   :  { %v510_v34 = vpop.permute.xlu0 %509 }
 0x397   :  { %v490_v58 = vpop.permute.xlu1 %489 }
 0x39a   :  { %608 = vmatmul.f32.gmra.mxu0 %v413_v7  ;;  %620 = vmatmul.f32.gmra.mxu2 %v421_v8 }
 0x39c   :  { %937 = vmatmul.msk.f32.gmra.mxu3 %vm537_vm2, %v420_v9 }
 0x39e   :  { %v495_v38 = vpop.permute.xlu0 %494 }
 0x3a2   :  { %611 = vmatmul.f32.gmra.mxu0 %v415_v10  ;;  %623 = vmatmul.f32.gmra.mxu2 %v423_v11 }
 0x3a4   :  { %938 = vmatmul.msk.f32.gmra.mxu3 %vm537_vm2, %v422_v12 }
 0x3a6   :  { %v480_v44 = vpop.permute.xlu0 %479 }
 0x3aa   :  { %626 = vmatmul.f32.gmra.mxu2 %v425_v13 }
 0x3ac   :  { %939 = vmatmul.msk.f32.gmra.mxu3 %vm537_vm2, %v424_v14 }
 0x3b2   :  { %629 = vmatmul.f32.gmra.mxu2 %v427_v15 }
 0x3b4   :  { %940 = vmatmul.msk.f32.gmra.mxu3 %vm537_vm2, %v426_v16 }
 0x3ba   :  { %632 = vmatmul.f32.gmra.mxu2 %v429_v17 }
 0x3bc   :  { %941 = vmatmul.msk.f32.gmra.mxu3 %vm537_vm2, %v428_v18 }
 0x3c2   :  { %635 = vmatmul.f32.gmra.mxu2 %v431_v19 }
 0x3c4   :  { %942 = vmatmul.msk.f32.gmra.mxu3 %vm537_vm2, %v430_v20 }
 0x3ca   :  { %638 = vmatmul.f32.gmra.mxu2 %v433_v21 }
 0x3cc   :  { %943 = vmatmul.msk.f32.gmra.mxu3 %vm537_vm2, %v432_v22 }
 0x3d2   :  { %641 = vmatmul.f32.gmra.mxu2 %v435_v23 }
 0x3d4   :  { %944 = vmatmul.msk.f32.gmra.mxu3 %vm537_vm2, %v434_v24 }
 0x3da   :  { %644 = vmatmul.f32.gmra.mxu2 %v437_v25 }
 0x3dc   :  { %945 = vmatmul.msk.f32.gmra.mxu3 %vm537_vm2, %v436_v26 }
 0x3e2   :  { %647 = vmatmul.f32.gmra.mxu2 %v439_v27 }
 0x3e4   :  { %946 = vmatmul.msk.f32.gmra.mxu3 %vm537_vm2, %v438_v28 }
 0x3ec   :  { %947 = vmatmul.msk.f32.gmra.mxu3 %vm537_vm2, %v440_v29 }
 0x3f7   :  { %v1423_v31 = vpop.f32.mrf.mxu3 }
 0x3ff   :  { %v1427_v33 = vpop.f32.mrf.mxu3 }
 0x407   :  { %v1431_v36 = vpop.f32.mrf.mxu3  ;;  %v603_v19 = vpop.f32.mrf.mxu0 }
 0x40d   :  { %v615_v39 = vpop.f32.mrf.mxu2 }
 0x40e   :  { %v616_v46 = vadd.f32 %v615_v39, %v480_v44 }
 0x40f   :  { %v1433_v40 = vpop.f32.mrf.mxu3  ;;  %v606_v26 = vpop.f32.mrf.mxu0 }
 0x415   :  { %v618_v45 = vpop.f32.mrf.mxu2 }
 0x416   :  { %v619_v54 = vadd.f32 %v618_v45, %v485_v52 }
 0x417   :  { %v680_v47 = vpop.f32.mrf.mxu3 }
 0x418   :  { %v681_v48 = vadd.f32 %v680_v47, %v616_v46 }
 0x41a   :  { %v1435_v49 = vmax.f32 %v681_v48, 0.0 }
 0x41c   :  { %740 = vrot.lane.b32.xlu1 %v1435_v49, %s1011_s14 }
 0x41d   :  { %v621_v53 = vpop.f32.mrf.mxu2 }
 0x41e   :  { %v622_v60 = vadd.f32 %v621_v53, %v490_v58 }
 0x41f   :  { %v683_v55 = vpop.f32.mrf.mxu3 }
 0x420   :  { %v684_v56 = vadd.f32 %v683_v55, %v619_v54 }
 0x422   :  { %v1439_v57 = vmax.f32 %v684_v56, 0.0 }
 0x424   :  { %742 = vrot.lane.b32.xlu2 %v1439_v57, %s1011_s14 }
 0x425   :  { %v624_v59 = vpop.f32.mrf.mxu2 }
 0x426   :  { %v625_v1 = vadd.f32 %v624_v59, %v495_v38  ;;  %v465_v59 = vpop.permute.xlu0 %464 }
 0x427   :  { %v686_v61 = vpop.f32.mrf.mxu3 }
 0x428   :  { %v687_v62 = vadd.f32 %v686_v61, %v622_v60 }
 0x42a   :  { %v1443_v63 = vmax.f32 %v687_v62, 0.0  ;;  %v607_v62 = vadd.f32 %v606_v26, %v465_v59 }
 0x42c   :  { %744 = vrot.lane.b32.xlu0 %v1443_v63, %s1011_s14 }
 0x42d   :  { %v627_v0 = vpop.f32.mrf.mxu2 }
 0x42e   :  { %v628_v6 = vadd.f32 %v627_v0, %v500_v42 }
 0x42f   :  { %v689_v2 = vpop.f32.mrf.mxu3 }
 0x430   :  { %v690_v3 = vadd.f32 %v689_v2, %v625_v1 }
 0x432   :  { %v1447_v4 = vmax.f32 %v690_v3, 0.0 }
 0x434   :  { %746 = vrot.lane.b32.xlu1 %v1447_v4, %s1011_s14 }
 0x435   :  { %v630_v5 = vpop.f32.mrf.mxu2 }
 0x436   :  { %v631_v11 = vadd.f32 %v630_v5, %v505_v51 }
 0x437   :  { %v692_v7 = vpop.f32.mrf.mxu3 }
 0x438   :  { %v693_v8 = vadd.f32 %v692_v7, %v628_v6 }
 0x43a   :  { %v1451_v9 = vmax.f32 %v693_v8, 0.0 }
 0x43c   :  { %748 = vrot.lane.b32.xlu2 %v1451_v9, %s1011_s14 }
 0x43d   :  { %v633_v10 = vpop.f32.mrf.mxu2 }
 0x43e   :  { %v634_v16 = vadd.f32 %v633_v10, %v510_v34 }
 0x43f   :  { %v695_v12 = vpop.f32.mrf.mxu3 }
 0x440   :  { %v696_v13 = vadd.f32 %v695_v12, %v631_v11 }
 0x442   :  { %v1455_v14 = vmax.f32 %v696_v13, 0.0 }
 0x444   :  { %750 = vrot.lane.b32.xlu0 %v1455_v14, %s1011_s14  ;;  %798 = vrot.lane.b32.xlu2 %v1455_v14, %s1013_s16 }
 0x445   :  { %v636_v15 = vpop.f32.mrf.mxu2 }
 0x446   :  { %v637_v22 = vadd.f32 %v636_v15, %v515_v37  ;;  %v609_v37 = vpop.f32.mrf.mxu0 }
 0x447   :  { %v698_v17 = vpop.f32.mrf.mxu3 }
 0x448   :  { %v699_v18 = vadd.f32 %v698_v17, %v634_v16 }
 0x44a   :  { %v1461_v20 = vmax.f32 %v699_v18, 0.0 }
 0x44c   :  { %800 = vrot.lane.b32.xlu0 %v1461_v20, %s1013_s16  ;;  %752 = vrot.lane.b32.xlu1 %v1461_v20, %s1011_s14 }
 0x44d   :  { %v639_v21 = vpop.f32.mrf.mxu2 }
 0x44e   :  { %v640_v27 = vadd.f32 %v639_v21, %v520_v41  ;;  %v612_v47 = vpop.f32.mrf.mxu0 }
 0x44f   :  { %v701_v23 = vpop.f32.mrf.mxu3 }
 0x450   :  { %v702_v24 = vadd.f32 %v701_v23, %v637_v22 }
 0x452   :  { %v1467_v25 = vmax.f32 %v702_v24, 0.0 }
 0x454   :  { %754 = vrot.lane.b32.xlu0 %v1467_v25, %s1011_s14  ;;  %802 = vrot.lane.b32.xlu1 %v1467_v25, %s1013_s16 }
 0x455   :  { %v642_v28 = vpop.f32.mrf.mxu2 }
 0x456   :  { %v643_v39 = vadd.f32 %v642_v28, %v1421_v30  ;;  %v475_v30 = vpop.permute.xlu1 %474 }
 0x457   :  { %v704_v29 = vpop.f32.mrf.mxu3  ;;  %v613_v52 = vadd.f32 %v612_v47, %v475_v30 }
 0x458   :  { %v705_v34 = vadd.f32 %v704_v29, %v640_v27 }
 0x459   :  { %v678_v55 = vadd.f32 %v1433_v40, %v613_v52  ;;  %v672_v40 = vadd.f32 %v1427_v33, %v607_v62 }
 0x45a   :  { %v1473_v38 = vmax.f32 %v705_v34, 0.0 }
 0x45b   :  { %v1495_v60 = vmax.f32 %v678_v55, 0.0  ;;  %v1506_v3 = vmax.f32 %v672_v40, 0.0 }
 0x45c   :  { %756 = vrot.lane.b32.xlu2 %v1473_v38, %s1011_s14 }
 0x45d   :  { %v645_v45 = vpop.f32.mrf.mxu2 }
 0x45e   :  { %v646_v41 = vadd.f32 %v645_v45, %v1425_v32  ;;  %v460_v0 = vpop.permute.xlu1 %459 }
 0x45f   :  { %v707_v42 = vpop.f32.mrf.mxu3  ;;  %v604_v1 = vadd.f32 %v603_v19, %v460_v0  ;;  %v982_v0 = vld [vmem:[%s1585_s2] ss:$0 sm:$0xff] }
 0x460   :  { %v708_v44 = vadd.f32 %v707_v42, %v643_v39 }
 0x461   :  { %v669_v5 = vadd.f32 %v1423_v31, %v604_v1  ;;  %v829_v31 = vld [vmem:[#allocation2] sm:$0x1] }
 0x462   :  { %v1478_v46 = vmax.f32 %v708_v44, 0.0 }
 0x463   :  { %v1516_v33 = vmax.f32 %v669_v5, 0.0 }
 0x464   :  { %804 = vrot.lane.b32.xlu2 %v1473_v38, %s1013_s16  ;;  %806 = vrot.lane.b32.xlu0 %v1478_v46, %s1013_s16 }
 0x465   :  { %758 = vrot.lane.b32.xlu1 %v1478_v46, %s1011_s14  ;;  %v648_v54 = vpop.f32.mrf.mxu2 }
 0x466   :  { %v649_v56 = vadd.f32 %v648_v54, %v1429_v35  ;;  %v470_v35 = vpop.permute.xlu2 %469 }
 0x467   :  { %v710_v48 = vpop.f32.mrf.mxu3  ;;  %v610_v2 = vadd.f32 %v609_v37, %v470_v35 }
 0x468   :  { %v711_v51 = vadd.f32 %v710_v48, %v646_v41 }
 0x469   :  { %v675_v6 = vadd.f32 %v1431_v36, %v610_v2 }
 0x46a   :  { %v1487_v53 = vmax.f32 %v711_v51, 0.0 }
 0x46b   :  { %v1518_v7 = vmax.f32 %v675_v6, 0.0 }
 0x46c   :  { %760 = vrot.lane.b32.xlu0 %v1487_v53, %s1011_s14 }
 0x46d   :  { %796 = vrot.lane.b32.xlu1 %v1451_v9, %s1013_s16 }
 0x46f   :  { %v713_v58 = vpop.f32.mrf.mxu3 }
 0x470   :  { %v714_v32 = vadd.f32 %v713_v58, %v649_v56 }
 0x472   :  { %v1497_v61 = vmax.f32 %v714_v32, 0.0 }
 0x474   :  { %762 = vrot.lane.b32.xlu2 %v1497_v61, %s1011_s14  ;;  %738 = vrot.lane.b32.xlu0 %v1495_v60, %s1011_s14 }
 0x475   :  { %808 = vrot.lane.b32.xlu1 %v1487_v53, %s1013_s16 }
 0x47c   :  { %810 = vrot.lane.b32.xlu2 %v1497_v61, %s1013_s16  ;;  %794 = vrot.lane.b32.xlu0 %v1447_v4, %s1013_s16 }
 0x47d   :  { %734 = vrot.lane.b32.xlu1 %v1506_v3, %s1011_s14 }
 0x47e   :  { %v743_v36 = vpop.permute.xlu2 %742 }
 0x47f   :  { %v769_v2 = vmul.f32 %v1141_v50, %v743_v36 }
 0x484   :  { %736 = vrot.lane.b32.xlu2 %v1518_v7, %s1011_s14  ;;  %732 = vrot.lane.b32.xlu0 %v1516_v33, %s1011_s14 }
 0x485   :  { %790 = vrot.lane.b32.xlu1 %v1439_v57, %s1013_s16 }
 0x48c   :  { %792 = vrot.lane.b32.xlu2 %v1443_v63, %s1013_s16  ;;  %786 = vrot.lane.b32.xlu0 %v1495_v60, %s1013_s16 }
 0x48d   :  { %784 = vrot.lane.b32.xlu1 %v1518_v7, %s1013_s16 }
 0x48e   :  { %v741_v12 = vpop.permute.xlu1 %740 }
 0x48f   :  { %v768_v6 = vmul.f32 %v1141_v50, %v741_v12 }
 0x494   :  { %780 = vrot.lane.b32.xlu0 %v1516_v33, %s1013_s16  ;;  %788 = vrot.lane.b32.xlu2 %v1435_v49, %s1013_s16 }
 0x495   :  { %832 = vperm.xlu1 %977, %v829_v31   ;;  %v983_v31 = vld [vmem:[%s1584_s1] ss:$0 sm:$0xff]  ;;  %s1015_s1 = smov [#allocation3]  }
 0x496   :  { %v749_v8 = vpop.permute.xlu2 %748 }
 0x497   :  { %v772_v55 = vmul.f32 %v1141_v50, %v749_v8 }
 0x49c   :  { %782 = vrot.lane.b32.xlu2 %v1506_v3, %s1013_s16 }
 0x49e   :  { %v745_v10 = vpop.permute.xlu0 %744  ;;  %v799_v11 = vpop.permute.xlu2 %798 }
 0x49f   :  { %v770_v40 = vmul.f32 %v1141_v50, %v745_v10  ;;  %v821_v5 = vmul.f32 %v982_v0, %v799_v11 }
 0x4a6   :  { %v747_v16 = vpop.permute.xlu1 %746 }
 0x4a7   :  { %v771_v32 = vmul.f32 %v1141_v50, %v747_v16 }
 0x4b6   :  { %v751_v13 = vpop.permute.xlu0 %750  ;;  %v757_v15 = vpop.permute.xlu2 %756 }
 0x4b7   :  { %v776_v45 = vmul.f32 %v1141_v50, %v757_v15  ;;  %v773_v52 = vmul.f32 %v1141_v50, %v751_v13 }
 0x4be   :  { %v801_v17 = vpop.permute.xlu0 %800  ;;  %v753_v18 = vpop.permute.xlu1 %752 }
 0x4bf   :  { %v805_v19 = vpop.permute.xlu2 %804  ;;  %v774_v48 = vmul.f32 %v1141_v50, %v753_v18  ;;  %v822_v1 = vmul.f32 %v982_v0, %v801_v17 }
 0x4c0   :  { %v824_v56 = vmul.f32 %v1131_v43, %v805_v19 }
 0x4c6   :  { %v755_v21 = vpop.permute.xlu0 %754  ;;  %v803_v23 = vpop.permute.xlu1 %802 }
 0x4c7   :  { %v775_v41 = vmul.f32 %v1141_v50, %v755_v21  ;;  %v823_v59 = vmul.f32 %v1131_v43, %v803_v23 }
 0x4ce   :  { %v763_v22 = vpop.permute.xlu2 %762 }
 0x4cf   :  { %v779_v24 = vmul.f32 %v1141_v50, %v763_v22 }
 0x4d1   :  { %843 = vmatpush.msra.mxu0 %v779_v24 }
 0x4d6   :  { %v811_v26 = vpop.permute.xlu2 %810  ;;  %v807_v27 = vpop.permute.xlu0 %806 }
 0x4d7   :  { %v827_v28 = vmul.f32 %v1131_v43, %v811_v26  ;;  %v759_v29 = vpop.permute.xlu1 %758  ;;  %v825_v54 = vmul.f32 %v1131_v43, %v807_v27 }
 0x4d8   :  { %v777_v42 = vmul.f32 %v1141_v50, %v759_v29 }
 0x4d9   :  { %883 = vmatpush.msrb.mxu1 %v827_v28 }
 0x4de   :  { %v761_v34 = vpop.permute.xlu0 %760  ;;  %v737_v44 = vpop.permute.xlu2 %736 }
 0x4df   :  { %v797_v37 = vpop.permute.xlu1 %796  ;;  %v778_v39 = vmul.f32 %v1141_v50, %v761_v34  ;;  %v766_v16 = vmul.f32 %v983_v31, %v737_v44  ;;  %v828_v50 = vld [vmem:[%s1594_s11] sm:$0x7]  ;;  %s909_s11 = sshll.u32 %s1015_s1, 4  ;;  %s910_s11 = int_to_ptr.vmem [resolvable:$true] %s909_s11 }
 0x4e0   :  { %v837_v18 = vperm.slane %v828_v50, 0  ;;  %v839_v34 = vperm.slane %v828_v50, 2 }
 0x4e1   :  { %844 = vmatpush.msra.mxu0 %v778_v39 }
 0x4e3   :  { %845 = vmatpush.msra.mxu0 %v777_v42 }
 0x4e5   :  { %846 = vmatpush.msra.mxu0 %v776_v45 }
 0x4e6   :  { %v739_v47 = vpop.permute.xlu0 %738  ;;  %v793_v58 = vpop.permute.xlu2 %792 }
 0x4e7   :  { %v809_v51 = vpop.permute.xlu1 %808  ;;  %847 = vmatpush.msra.mxu0 %v775_v41  ;;  %v767_v8 = vmul.f32 %v983_v31, %v739_v47  ;;  %v818_v11 = vmul.f32 %v982_v0, %v793_v58 }
 0x4e8   :  { %v826_v30 = vmul.f32 %v1131_v43, %v809_v51  ;;  %v820_v43 = vmul.f32 %v982_v0, %v797_v37 }
 0x4e9   :  { %848 = vmatpush.msra.mxu0 %v774_v48 }
 0x4ea   :  { %884 = vmatpush.msrb.mxu1 %v826_v30 }
 0x4eb   :  { %849 = vmatpush.msra.mxu0 %v773_v52 }
 0x4ec   :  { %885 = vmatpush.msrb.mxu1 %v825_v54 }
 0x4ed   :  { %850 = vmatpush.msra.mxu0 %v772_v55 }
 0x4ee   :  { %886 = vmatpush.msrb.mxu1 %v824_v56  ;;  %v795_v62 = vpop.permute.xlu0 %794  ;;  %v789_v10 = vpop.permute.xlu2 %788 }
 0x4ef   :  { %v735_v35 = vpop.permute.xlu1 %734  ;;  %851 = vmatpush.msra.mxu0 %v771_v32  ;;  %v819_v13 = vmul.f32 %v982_v0, %v795_v62  ;;  %v816_v21 = vmul.f32 %v982_v0, %v789_v10 }
 0x4f0   :  { %887 = vmatpush.msrb.mxu1 %v823_v59  ;;  %v765_v12 = vmul.f32 %v983_v31, %v735_v35 }
 0x4f1   :  { %852 = vmatpush.msra.mxu0 %v770_v40 }
 0x4f2   :  { %888 = vmatpush.msrb.mxu1 %v822_v1 }
 0x4f3   :  { %853 = vmatpush.msra.mxu0 %v769_v2 }
 0x4f4   :  { %889 = vmatpush.msrb.mxu1 %v821_v5 }
 0x4f5   :  { %854 = vmatpush.msra.mxu0 %v768_v6 }
 0x4f6   :  { %890 = vmatpush.msrb.mxu1 %v820_v43  ;;  %v733_v15 = vpop.permute.xlu0 %732  ;;  %v783_v26 = vpop.permute.xlu2 %782 }
 0x4f7   :  { %v791_v36 = vpop.permute.xlu1 %790  ;;  %855 = vmatpush.msra.mxu0 %v767_v8  ;;  %v764_v19 = vmul.f32 %v983_v31, %v733_v15  ;;  %v813_v28 = vmul.f32 %v982_v0, %v783_v26 }
 0x4f8   :  { %891 = vmatpush.msrb.mxu1 %v819_v13  ;;  %v817_v17 = vmul.f32 %v982_v0, %v791_v36 }
 0x4f9   :  { %856 = vmatpush.msra.mxu0 %v766_v16 }
 0x4fa   :  { %892 = vmatpush.msrb.mxu1 %v818_v11 }
 0x4fb   :  { %857 = vmatpush.msra.mxu0 %v765_v12 }
 0x4fc   :  { %893 = vmatpush.msrb.mxu1 %v817_v17 }
 0x4fd   :  { %858 = vmatpush.msra.mxu0 %v764_v19 }
 0x4fe   :  { %894 = vmatpush.msrb.mxu1 %v816_v21  ;;  %859 = vmatmul.f32.vlgmr.msra.gmra.mxu0 %v837_v18  ;;  %v787_v22 = vpop.permute.xlu0 %786 }
 0x4ff   :  { %v785_v23 = vpop.permute.xlu1 %784  ;;  %863 = vmatpush.msrb.mxu0 %v1497_v61  ;;  %v815_v24 = vmul.f32 %v982_v0, %v787_v22 }
 0x500   :  { %v814_v27 = vmul.f32 %v982_v0, %v785_v23 }
 0x501   :  { %864 = vmatpush.msrb.mxu0 %v1487_v53  ;;  %895 = vmatpush.msrb.mxu1 %v815_v24 }
 0x503   :  { %865 = vmatpush.msrb.mxu0 %v1478_v46  ;;  %896 = vmatpush.msrb.mxu1 %v814_v27 }
 0x505   :  { %866 = vmatpush.msrb.mxu0 %v1473_v38  ;;  %897 = vmatpush.msrb.mxu1 %v813_v28 }
 0x506   :  { %v781_v29 = vpop.permute.xlu0 %780 }
 0x507   :  { %867 = vmatpush.msrb.mxu0 %v1467_v25  ;;  %v812_v37 = vmul.f32 %v982_v0, %v781_v29  ;;  %v838_v25 = vperm.slane %v828_v50, 1 }
 0x509   :  { %868 = vmatpush.msrb.mxu0 %v1461_v20  ;;  %898 = vmatpush.msrb.mxu1 %v812_v37 }
 0x50a   :  { %899 = vmatmul.f32.vlgmr.msrb.gmra.mxu1 %v839_v34 }
 0x50b   :  { %869 = vmatpush.msrb.mxu0 %v1455_v14 }
 0x50d   :  { %870 = vmatpush.msrb.mxu0 %v1451_v9  ;;  %v833_v9 = vpop.permute.xlu1 %832 }
 0x50e   :  { %v835_v20 = vperm.slane %v833_v9, 0 }
 0x50f   :  { %871 = vmatpush.msrb.mxu0 %v1447_v4 }
 0x511   :  { %872 = vmatpush.msrb.mxu0 %v1443_v63 }
 0x513   :  { %873 = vmatpush.msrb.mxu0 %v1439_v57 }
 0x515   :  { %874 = vmatpush.msrb.mxu0 %v1435_v49 }
 0x517   :  { %875 = vmatpush.msrb.mxu0 %v1495_v60 }
 0x519   :  { %876 = vmatpush.msrb.mxu0 %v1518_v7 }
 0x51b   :  { %877 = vmatpush.msrb.mxu0 %v1506_v3 }
 0x51d   :  { %878 = vmatpush.msrb.mxu0 %v1516_v33 }
 0x51e   :  { %879 = vmatmul.f32.vlgmr.msrb.gmra.mxu0 %v838_v25 }
 0x57b   :  { %v860_v14 = vpop.f32.mrf.mxu0 }
 0x57c   :  { %v861_v4 = vadd.f32 %v860_v14, %v835_v20 }
 0x587   :  { %v900_v63 = vpop.f32.mrf.mxu1 }
 0x59b   :  { %v880_v38 = vpop.f32.mrf.mxu0 }
 0x59c   :  { %v881_v49 = vadd.f32 %v880_v38, %v861_v4 }
 0x59e   :  { %v901_v57 = vadd.f32 %v900_v63, %v881_v49 }
 0x5a0   :  { %903 = vst [vmem:[#allocation3] sm:$0x1] %v901_v57 }
 0x5a1   :  { %914 = dma.vmem_to_hbm [thread:$0]  %s910_s11, 16, %s912_s20, [#allocation4]  }
 0x5a2   :  { %1008 = dma.done.wait [#allocation4], 16  }
 0x5a3   :  { %1009 = vsyncadd [#allocation4], 4294967280 }
 0x5a4   :  { %919 = vsyncpa [#allocation4], 1 }

</bundles_post_ra>
